<compile_context>
chip_gen: v7x
topology: tpu7x:2x2x1
jax: 0.10.0
libtpu: 0.0.40
codegen_flags: <defaults>
</compile_context>

<pallas_src>
import math
import jax
import jax.numpy as jnp
from jax.experimental import pallas as pl
from jax.experimental.pallas import tpu as pltpu


def _round_up(n, m):
    return ((n + m - 1) // m) * m


def _choose_tile_and_pad(dim, max_tile):
    """Pick a tile (multiple of 128, <= max_tile) and pad dim to a multiple of it."""
    tile = min(max_tile, _round_up(dim, 128))
    tile = max(128, (tile // 128) * 128)
    return tile, _round_up(dim, tile)


def _pick_tile(dim_padded, max_tile):
    """Largest multiple of 128 <= max_tile that divides dim_padded (>= 128)."""
    t = min(max_tile, dim_padded)
    t = max(128, (t // 128) * 128)
    while t > 128 and dim_padded % t != 0:
        t -= 128
    return t


def _lr_kernel_fused(x_ref, w_ref, scale_ref, b_ref, o_ref):
    """f32 output: accumulate directly into the VMEM-resident output block."""
    k = pl.program_id(2)

    @pl.when(k == 0)
    def _init():
        o_ref[...] = jnp.zeros_like(o_ref)

    x = x_ref[...]
    w = w_ref[...]
    if w.dtype != x.dtype:            # static: int8 (or mismatched) weight stream
        w = w.astype(x.dtype)
    o_ref[...] += jnp.dot(x, w, preferred_element_type=jnp.float32)

    @pl.when(k == pl.num_programs(2) - 1)
    def _finalize():
        o_ref[...] = o_ref[...] * scale_ref[...] + b_ref[...]


def _lr_kernel_scratch(x_ref, w_ref, scale_ref, b_ref, o_ref, acc_ref):
    """Non-f32 output: f32 VMEM accumulator, cast at finalize."""
    k = pl.program_id(2)

    @pl.when(k == 0)
    def _init():
        acc_ref[...] = jnp.zeros_like(acc_ref)

    x = x_ref[...]
    w = w_ref[...]
    if w.dtype != x.dtype:
        w = w.astype(x.dtype)
    acc_ref[...] += jnp.dot(x, w, preferred_element_type=jnp.float32)

    @pl.when(k == pl.num_programs(2) - 1)
    def _finalize():
        o_ref[...] = (acc_ref[...] * scale_ref[...] + b_ref[...]).astype(o_ref.dtype)


def init_lr_params(key, indim, outdim, param_dtype=jnp.float32, *,
                   max_k_tile=512, max_o_tile=512):
    """nn.Linear default init U(-1/sqrt(indim), ...), stored pre-transposed &
    padded to tile multiples.  Returns (w_stream, scale_row, bias_row,
    weight_raw, bias_raw)."""
    kw, kb = jax.random.split(key)
    bound = 1.0 / math.sqrt(indim)
    weight = jax.random.uniform(kw, (outdim, indim), jnp.float32, -bound, bound)
    bias = jax.random.uniform(kb, (outdim,), jnp.float32, -bound, bound)

    _, d_pad = _choose_tile_and_pad(indim, max_k_tile)
    _, o_pad = _choose_tile_and_pad(outdim, max_o_tile)

    w_t = jnp.zeros((d_pad, o_pad), jnp.float32).at[:indim, :outdim].set(weight.T)
    b2 = jnp.zeros((1, o_pad), jnp.float32).at[0, :outdim].set(bias)

    if param_dtype == jnp.int8:
        # Symmetric per-output-channel quantization; scale applied at finalize.
        absmax = jnp.max(jnp.abs(w_t), axis=0, keepdims=True)          # (1, o_pad)
        scale = jnp.where(absmax > 0, absmax / 127.0, 1.0).astype(jnp.float32)
        w_stream = jnp.round(w_t / scale).astype(jnp.int8)
    else:
        scale = jnp.ones((1, o_pad), jnp.float32)
        w_stream = w_t.astype(param_dtype)
    return w_stream, scale, b2, weight, bias


def lr_forward(image, w_t, scale, bias2d, out_features, *,
               max_tile=512, out_dtype=jnp.float32):
    """image: (B, C, H, W); w_t: (D_pad, O_pad) pre-transposed padded weight
    (f32/bf16/int8); scale: (1, O_pad) f32 dequant row; bias2d: (1, O_pad) f32."""
    B = image.shape[0]
    d_pad, o_pad = w_t.shape

    # Single cast to the stream dtype (bf16 for compressed weights) so x makes
    # one HBM round trip at stream width — no re-cast inside the kernel.
    x_dtype = jnp.float32 if w_t.dtype == jnp.float32 else jnp.bfloat16
    x = image.reshape(B, -1).astype(x_dtype)                 # glue reshape
    D = x.shape[1]
    if D < d_pad:
        x = jnp.pad(x, ((0, 0), (0, d_pad - D)))             # zero-pad K dim

    # Batch tiling: bounds VMEM as B grows, gives a real "parallel" axis.
    bm = B if B <= 256 else 256
    b_pad = _round_up(B, bm)
    if b_pad != B:
        x = jnp.pad(x, ((0, b_pad - B), (0, 0)))

    tk = _pick_tile(d_pad, max_tile)                         # K tile
    to = _pick_tile(o_pad, max_tile)                         # O tile
    grid = (b_pad // bm, o_pad // to, d_pad // tk)           # reduction last

    fuse_acc = (out_dtype == jnp.float32)
    kernel = _lr_kernel_fused if fuse_acc else _lr_kernel_scratch
    scratch = [] if fuse_acc else [pltpu.VMEM((bm, to), jnp.float32)]

    # VMEM budget: double-buffered x/w/scale/bias/out tiles (+ optional acc).
    isz = lambda dt: jnp.dtype(dt).itemsize
    est = 2 * (bm * tk * isz(x_dtype) + tk * to * isz(w_t.dtype)
               + 2 * to * 4 + bm * to * isz(out_dtype))
    if not fuse_acc:
        est += bm * to * 4
    vmem_limit = int(min(48 * 2**20, max(2 * est, 32 * 2**20)))  # safe on v7x 64 MiB

    out_padded = pl.pallas_call(
        kernel,
        out_shape=jax.ShapeDtypeStruct((b_pad, o_pad), out_dtype),
        grid=grid,
        in_specs=[
            pl.BlockSpec((bm, tk), lambda i, j, k: (i, k)),   # x: batch x K tiles
            pl.BlockSpec((tk, to), lambda i, j, k: (k, j)),   # w: K x O tiles
            pl.BlockSpec((1, to), lambda i, j, k: (0, j)),    # scale: const over K
            pl.BlockSpec((1, to), lambda i, j, k: (0, j)),    # bias:  const over K
        ],
        out_specs=pl.BlockSpec((bm, to), lambda i, j, k: (i, j)),
        scratch_shapes=scratch,
        compiler_params=pltpu.CompilerParams(
            dimension_semantics=("parallel", "parallel", "arbitrary"),
            vmem_limit_bytes=vmem_limit,
        ),
    )(x, w_t, scale, bias2d)
    return out_padded[:B, :out_features]


if __name__ == "__main__":
    key = jax.random.PRNGKey(0)
    k_img, k_par = jax.random.split(key)

    B, C, H, W = 2, 4, 16, 16
    indim = C * H * W          # 1024
    outdim = 32

    image = jax.random.normal(k_img, (B, C, H, W), jnp.float32)
    ref = None

    # ---- f32 path: exact nn.Linear semantics ------------------------------
    w_t, sc, b2, weight, bias = init_lr_params(k_par, indim, outdim, jnp.float32)
    out = jax.block_until_ready(lr_forward(image, w_t, sc, b2, outdim))
    ref = image.reshape(B, -1) @ weight.T + bias
    assert out.shape == (B, outdim)
    assert jnp.allclose(out, ref, atol=1e-4, rtol=1e-4), "f32 path mismatch"

    # ---- bf16 weight-streaming path (f32 accumulation) ---------------------
    w16, sc16, b216, _, _ = init_lr_params(k_par, indim, outdim, jnp.bfloat16)
    out16 = jax.block_until_ready(lr_forward(image, w16, sc16, b216, outdim))
    assert jnp.allclose(out16, ref, atol=5e-2, rtol=5e-2), "bf16 path mismatch"

    # ---- int8 weight-streaming path (per-channel scale at finalize) --------
    w8, sc8, b28, _, _ = init_lr_params(k_par, indim, outdim, jnp.int8)
    out8 = jax.block_until_ready(lr_forward(image, w8, sc8, b28, outdim))
    assert jnp.allclose(out8, ref, atol=1e-1, rtol=1e-1), "int8 path mismatch"

    print("KERNEL_OK")
</pallas_src>

<mosaic_0001>
module attributes {stable_mosaic.version = 11 : i64} {
  func.func @_lr_kernel_fused(%arg0: i32, %arg1: i32, %arg2: i32, %arg3: memref<2x512xf32, #tpu.memory_space<vmem>>, %arg4: memref<512x128xf32, #tpu.memory_space<vmem>>, %arg5: memref<1x128xf32, #tpu.memory_space<vmem>>, %arg6: memref<1x128xf32, #tpu.memory_space<vmem>>, %arg7: memref<2x128xf32, #tpu.memory_space<vmem>>) attributes {dimension_semantics = [#tpu.dimension_semantics<parallel>, #tpu.dimension_semantics<parallel>, #tpu.dimension_semantics<arbitrary>], iteration_bounds = array<i64: 1, 1, 2>, scalar_prefetch = 0 : i64, scratch_operands = 0 : i64, tpu.core_type = #tpu.core_type<tc>, window_params = [{transform_indices = @transform_0, window_bounds = array<i64: 2, 512>}, {transform_indices = @transform_1, window_bounds = array<i64: 512, 128>}, {transform_indices = @transform_2, window_bounds = array<i64: 1, 128>}, {transform_indices = @transform_3, window_bounds = array<i64: 1, 128>}, {transform_indices = @transform_4, window_bounds = array<i64: 2, 128>}]} {
    %c0_i32 = arith.constant 0 : i32
    %0 = arith.cmpi eq, %arg2, %c0_i32 : i32
    %1 = arith.extui %0 : i1 to i32
    %c0_i32_0 = arith.constant 0 : i32
    %2 = arith.cmpi ne, %1, %c0_i32_0 : i32
    scf.if %2 {
      %cst_9 = arith.constant 0.000000e+00 : f32
      %12 = vector.broadcast %cst_9 : f32 to vector<2x128xf32>
      %c0_10 = arith.constant 0 : index
      %c0_11 = arith.constant 0 : index
      %13 = vector.load %arg7[%c0_10, %c0_11] : memref<2x128xf32, #tpu.memory_space<vmem>>, vector<2x128xf32>
      tpu.vector_store %arg7[%c0_10, %c0_11], %12 {strides = array<i32>} : memref<2x128xf32, #tpu.memory_space<vmem>>, vector<2x128xf32>,
    } else {
    }
    %c0 = arith.constant 0 : index
    %c0_1 = arith.constant 0 : index
    %3 = vector.load %arg3[%c0, %c0_1] : memref<2x512xf32, #tpu.memory_space<vmem>>, vector<2x512xf32>
    %c0_2 = arith.constant 0 : index
    %c0_3 = arith.constant 0 : index
    %4 = vector.load %arg4[%c0_2, %c0_3] : memref<512x128xf32, #tpu.memory_space<vmem>>, vector<512x128xf32>
    %c0_4 = arith.constant 0 : index
    %c0_5 = arith.constant 0 : index
    %5 = vector.load %arg7[%c0_4, %c0_5] : memref<2x128xf32, #tpu.memory_space<vmem>>, vector<2x128xf32>
    %cst = arith.constant dense<0.000000e+00> : vector<2x128xf32>
    %6 = tpu.matmul %3, %4, %cst {dimension_numbers = #tpu.dot_dimension_numbers<[1], [0], [0], [1], [0, 0, 1, 1], [], []>} : vector<2x512xf32>, vector<512x128xf32>, vector<2x128xf32> -> vector<2x128xf32>
    %7 = arith.addf %5, %6 : vector<2x128xf32>
    %c0_6 = arith.constant 0 : index
    %c0_7 = arith.constant 0 : index
    %8 = vector.load %arg7[%c0_6, %c0_7] : memref<2x128xf32, #tpu.memory_space<vmem>>, vector<2x128xf32>
    tpu.vector_store %arg7[%c0_6, %c0_7], %7 {strides = array<i32>} : memref<2x128xf32, #tpu.memory_space<vmem>>, vector<2x128xf32>,
    %c1_i32 = arith.constant 1 : i32
    %9 = arith.cmpi eq, %arg2, %c1_i32 : i32
    %10 = arith.extui %9 : i1 to i32
    %c0_i32_8 = arith.constant 0 : i32
    %11 = arith.cmpi ne, %10, %c0_i32_8 : i32
    scf.if %11 {
      %c0_9 = arith.constant 0 : index
      %c0_10 = arith.constant 0 : index
      %12 = vector.load %arg7[%c0_9, %c0_10] : memref<2x128xf32, #tpu.memory_space<vmem>>, vector<2x128xf32>
      %c0_11 = arith.constant 0 : index
      %c0_12 = arith.constant 0 : index
      %13 = vector.load %arg5[%c0_11, %c0_12] : memref<1x128xf32, #tpu.memory_space<vmem>>, vector<1x128xf32>
      %14 = vector.broadcast %13 : vector<1x128xf32> to vector<2x128xf32>
      %15 = arith.mulf %12, %14 : vector<2x128xf32>
      %c0_13 = arith.constant 0 : index
      %c0_14 = arith.constant 0 : index
      %16 = vector.load %arg6[%c0_13, %c0_14] : memref<1x128xf32, #tpu.memory_space<vmem>>, vector<1x128xf32>
      %17 = vector.broadcast %16 : vector<1x128xf32> to vector<2x128xf32>
      %18 = arith.addf %15, %17 : vector<2x128xf32>
      %c0_15 = arith.constant 0 : index
      %c0_16 = arith.constant 0 : index
      %19 = vector.load %arg7[%c0_15, %c0_16] : memref<2x128xf32, #tpu.memory_space<vmem>>, vector<2x128xf32>
      tpu.vector_store %arg7[%c0_15, %c0_16], %18 {strides = array<i32>} : memref<2x128xf32, #tpu.memory_space<vmem>>, vector<2x128xf32>,
    } else {
    }
    return
  }
  func.func @transform_0(%arg0: i32, %arg1: i32, %arg2: i32) -> (i32, i32) {
    %c0_i32 = arith.constant 0 : i32
    return %arg0, %arg2 : i32, i32
  }
  func.func @transform_1(%arg0: i32, %arg1: i32, %arg2: i32) -> (i32, i32) {
    %c0_i32 = arith.constant 0 : i32
    return %arg2, %arg1 : i32, i32
  }
  func.func @transform_2(%arg0: i32, %arg1: i32, %arg2: i32) -> (i32, i32) {
    %c0_i32 = arith.constant 0 : i32
    %c0_i32_0 = arith.constant 0 : i32
    return %c0_i32, %arg1 : i32, i32
  }
  func.func @transform_3(%arg0: i32, %arg1: i32, %arg2: i32) -> (i32, i32) {
    %c0_i32 = arith.constant 0 : i32
    %c0_i32_0 = arith.constant 0 : i32
    return %c0_i32, %arg1 : i32, i32
  }
  func.func @transform_4(%arg0: i32, %arg1: i32, %arg2: i32) -> (i32, i32) {
    %c0_i32 = arith.constant 0 : i32
    return %arg0, %arg1 : i32, i32
  }
}

</mosaic_0001>

<bundles_post_ra>
// kernel: tpu_custom_call.1
= control target key start
LH: loop header
LB: loop body
LE: loop exit
PB: predicated region body
PF: predicated region fallthrough
CT: control target
= control target key end

     0   :  { %9 = vsyncpa [#allocation3], 0  ;;  %s1373_s0 = inlined_call_operand.hbm [shape: f32[2,1024], index: 0, kind: input, shape index: {}]   ;;  %s1374_s1 = inlined_call_operand.hbm [shape: f32[1024,128], index: 1, kind: input, shape index: {}]   ;;  %s1375_s2 = inlined_call_operand.vmem [shape: f32[1,128], index: 2, kind: input, shape index: {}]   ;;  %s1376_s3 = inlined_call_operand.vmem [shape: f32[1,128], index: 3, kind: input, shape index: {}]   ;;  %s1377_s4 = inlined_call_operand.hbm [shape: f32[2,128], index: 4, kind: output, shape index: {}]  }
   0x1   :  { %11 = vsyncpa [#allocation3 + $0x1], 0 }
   0x2   :  { %12 = vsyncpa [#allocation6], 0 }
   0x3   :  { %14 = vsyncpa [#allocation6 + $0x1], 0 }
   0x4   :  { %15 = vsyncpa [#allocation4], 0  ;;  %s1097_s15 = smov 0   ;;  %s1099_s16 = smov 0  }
   0x5   :  { %s1101_s17 = smov 0   ;;  %s1103_s18 = smov 0  }
   0x6   :  { %s1105_s19 = smov 0   ;;  %s1107_s20 = smov 0  }
   0x7 LB: > { %s689_s21 = sadd.s32 4294967295, %s1063_s20   ;;  %s33_s22 = sadd.s32 1, %s1059_s19  ;;  %s1063_s20 = sphi %s1107_s20, %s21_s20   ;;  %s1059_s19 = sphi %s1105_s19, %s1391_s19   ;;  %s1055_s18 = sphi %s1103_s18, %s1390_s18   ;;  %s1051_s17 = sphi %s1101_s17, %s1389_s17   ;;  %s1047_s16 = sphi %s1099_s16, %s1388_s16   ;;  %s1043_s15 = sphi %s1097_s15, %s1387_s15  }
   0x8   : > { %p34_p0 = scmp.ge.s32.totalorder %s33_s22, 2  ;;  %s49_s23 = sadd.s32 1, %s1051_s17 }
   0x9   : > { %p56_p1 = scmp.ne.s32.totalorder %s1051_s17, %s1047_s16  ;;  %p57_p2 = scmp.eq.s32.totalorder %s1063_s20, 0 }
   0xa   : > { %s1393_s22 = smov (%p34_p0, %s33_s22), 0  ;;  %p62_p4 = scmp.ne.s32.totalorder %s1047_s16, %s1043_s15 }
   0xb   : > { %p1133_p3 = por %p57_p2, %p56_p1  ;;  %s45_s25 = ssub.s32 %s1059_s19, %s1393_s22 }
   0xc   : > { %p63_p5 = scmp.eq.s32.totalorder %s689_s21, 0  ;;  %p47_p6 = scmp.eq.s32.totalorder %s45_s25, 0 }
   0xd   : > { %p862_p8 = scmp.lt.s32.totalorder %s1063_s20, 2  ;;  %s1151_s28 = sand.u32 1, %s1051_s17  }
   0xe   : > { %p1142_p7 = por %p63_p5, %p62_p4  ;;  %s711_s29 = sshll.u32 %s1059_s19, 7 }
   0xf   : > { %s1148_s27 = scalar_select %p47_p6, %s1051_s17, %s49_s23  }
  0x10   : > { %s1380_s26 = scalar_select %p1142_p7, 1, 0 }
  0x11   : > { %s694_s30 = sshll.u32 %s1151_s28, 3  ;;  %s1158_s7 = scalar_lea.hbm %s1373_s0, %s711_s29 }
  0x12   : > { %s210_s8 = scalar_lea.vmem [#allocation2], %s694_s30  ;;  %p1162_p9 = pnand %p862_p8, %p1133_p3 }
  0x13   : > { %s220_s9 = sshll.u32 %s210_s8, 4  ;;  %s207_s11 = scalar_lea.sflag [#allocation3], %s1151_s28  ;;  %s1166_s9 = int_to_ptr.vmem [resolvable:$true] %s220_s9 }
  0x14   : > { %s919_s12 = scalar_lea.hbm %s1158_s7, 128  ;;  %p921_p13 = pneg %p1162_p9 }
  0x15   : > { %p920_p12 = scmp.ne.s32.totalorder %s1158_s7, %s919_s12  ;;  %s924_s15 = scalar_lea.hbm %s1373_s0, 256 }
  0x16   : > { %p925_p2 = scmp.lt.u32.totalorder %s1158_s7, %s1373_s0  ;;  %p926_p3 = scmp.lt.u32.totalorder %s924_s15, %s919_s12 }
  0x17   : > { %p922_p0 = pnand %p921_p13, %p920_p12  ;;  %p928_p5 = scmp.lt.u32.totalorder %s919_s12, %s1158_s7 }
  0x18   : > { %p927_p4 = por %p926_p3, %p925_p2 }
  0x19   : > { %p923_p1 = pneg %p922_p0 }
  0x1a   : > { %p929_p6 = por %p928_p5, %p927_p4 }
  0x1c   : > { %p930_p8 = pnand %p929_p6, %p923_p1 }
  0x1e   : > { %933 = shalt.err (!%p930_p8)
}
  0x1f   : > { %s934_s25 = scalar_lea.vmem %s1166_s9, 128  ;;  %s1065_s29 = smov [#allocation2]  }
  0x20   : > { %p935_p12 = scmp.ne.s32.totalorder %s1166_s9, %s934_s25  ;;  %s939_s30 = sshll.u32 %s1065_s29, 4  ;;  %s940_s30 = int_to_ptr.vmem [resolvable:$false] %s939_s30 }
  0x21   : > { %s941_s5 = scalar_lea.vmem %s940_s30, 256  ;;  %p942_p11 = scmp.lt.s32.totalorder %s1166_s9, %s940_s30 }
  0x22   : > { %p937_p0 = pnand %p935_p12, %p921_p13  ;;  %p943_p2 = scmp.lt.s32.totalorder %s941_s5, %s934_s25 }
  0x24   : > { %p938_p10 = pneg %p937_p0  ;;  %p944_p3 = por %p943_p2, %p942_p11 }
  0x26   : > { %p945_p4 = pnand %p944_p3, %p938_p10 }
  0x28   : > { %948 = shalt.err (!%p945_p4)
}
  0x29   : > { %858 = dma.hbm_to_vmem [thread:$0]  (!%p1162_p9), %s1158_s7, 128, %s1166_s9, %s207_s11  }
  0x2a   : > { %p1382_p1 = scmp.lt.s32.totalorder %s1063_s20, 3  ;;  %p1383_p5 = scmp.ge.s32.totalorder %s1063_s20, 1 }
  0x2b   : > { %s697_s8 = sshll.u32 %s1151_s28, 9  ;;  %s712_s12 = sshll.u32 %s1059_s19, 13 }
  0x2c   : > { %p1200_p6 = pnand %p1383_p5, %p1382_p1  ;;  %s1209_s15 = scalar_lea.hbm %s1374_s1, %s712_s12 }
  0x2d   : > { %s231_s23 = scalar_lea.vmem [#allocation5], %s697_s8  ;;  %s228_s7 = scalar_lea.sflag [#allocation6], %s1151_s28 }
  0x2e   : > { %s239_s24 = sshll.u32 %s231_s23, 4  ;;  %s949_s9 = scalar_lea.hbm %s1209_s15, 8192  ;;  %s1211_s24 = int_to_ptr.vmem [resolvable:$true] %s239_s24 }
  0x2f   : > { %p950_p10 = scmp.ne.s32.totalorder %s1209_s15, %s949_s9  ;;  %s954_s29 = scalar_lea.hbm %s1374_s1, 16384 }
  0x30   : > { %p955_p12 = scmp.lt.u32.totalorder %s1209_s15, %s1374_s1  ;;  %p956_p0 = scmp.lt.u32.totalorder %s954_s29, %s949_s9 }
  0x31   : > { %p952_p11 = pnand %p950_p10, %p921_p13  ;;  %p958_p3 = scmp.lt.u32.totalorder %s949_s9, %s1209_s15 }
  0x32   : > { %p957_p2 = por %p956_p0, %p955_p12 }
  0x33   : > { %p953_p8 = pneg %p952_p11 }
  0x34   : > { %p959_p4 = por %p958_p3, %p957_p2 }
  0x36   : > { %p960_p1 = pnand %p959_p4, %p953_p8 }
  0x38   : > { %963 = shalt.err (!%p960_p1)
}
  0x39   : > { %s964_s8 = scalar_lea.vmem %s1211_s24, 8192  ;;  %s1066_s12 = smov [#allocation5]  }
  0x3a   : > { %p965_p5 = scmp.ne.s32.totalorder %s1211_s24, %s964_s8  ;;  %s969_s13 = sshll.u32 %s1066_s12, 4  ;;  %s970_s13 = int_to_ptr.vmem [resolvable:$false] %s969_s13 }
  0x3b   : > { %s971_s14 = scalar_lea.vmem %s970_s13, 16384  ;;  %p972_p7 = scmp.lt.s32.totalorder %s1211_s24, %s970_s13 }
  0x3c   : > { %p967_p10 = pnand %p965_p5, %p921_p13  ;;  %p973_p12 = scmp.lt.s32.totalorder %s971_s14, %s964_s8 }
  0x3e   : > { %p968_p11 = pneg %p967_p10  ;;  %p974_p0 = por %p973_p12, %p972_p7 }
  0x40   : > { %p975_p2 = pnand %p974_p0, %p968_p11 }
  0x42   : > { %978 = shalt.err (!%p975_p2)
}
  0x43   : > { %s1067_s23 = smov 128   ;;  %s1068_s9 = smov 8  }
  0x44   : > { %861 = dma.hbm_to_vmem [thread:$0]  (!%p1162_p9), %s1209_s15, 8192, %s1211_s24, %s228_s7, %s1067_s23, %s1067_s23, %s1068_s9  }
  0x45   : > { %251 = sbr.rel (%p1200_p6) target bundleno = 383 (0x17f), region = 36  ;;  %s253_s11 = sand.u32 (!%p1200_p6), 1, %s1047_s16  }
  0x46   : > { %s701_s25 = sshll.u32 (!%p1200_p6), %s253_s11, 3  ;;  %s254_s29 = scalar_lea.sflag (!%p1200_p6), [#allocation3], %s253_s11 }
  0x47   : > { %s1242_s30 = scalar_lea.vmem (!%p1200_p6), [#allocation2], %s701_s25  ;;  %p1385_p7 = scmp.ne.s32.totalorder (!%p1200_p6), %s1380_s26, 0 }
  0x4c   : > { %1030 = dma.done.wait (%p1385_p7), %s254_s29, 128  }
  0x4d   : > { %1032 = vsyncadd (%p1385_p7), %s254_s29, 4294967168  ;;  %s702_s5 = sshll.u32 %s253_s11, 9  ;;  %s263_s10 = scalar_lea.sflag [#allocation6], %s253_s11 }
  0x4e   : > { %s1248_s28 = scalar_lea.vmem [#allocation5], %s702_s5 }
  0x4f   : > { %1034 = dma.done.wait (%p1385_p7), %s263_s10, 8192  }
  0x50   : > { %1036 = vsyncadd (%p1385_p7), %s263_s10, 4294959104  ;;  %p703_p9 = scmp.ne.s32.totalorder %s1055_s18, 0 }
  0x51   : > { %v1069_v0 = vmov (!%p703_p9), 0.0  }
  0x52   : > { %308 = sbr.rel (%p703_p9) target bundleno = 89 (0x59), region = 48  ;;  %309 = vst [vmem:[#allocation7] sm:$0x3] (!%p703_p9), %v1069_v0 }
  0x59 PF: > { %v327_v1 = vld [vmem:[%s1248_s28 + $0x80] sm:$0xff]  ;;  %v328_v2 = vld [vmem:[%s1248_s28 + $0x88] sm:$0xff]  ;;  %v329_v12 = vld [vmem:[%s1248_s28 + $0x90] sm:$0xff]  ;;  %v1070_v48 = vmov 1983009808   ;;  %v381_v50 = vlaneseq  ;;  %p704_p13 = scmp.ne.s32.totalorder %s1055_s18, 1 }
  0x5a   : > { %v359_v3 = vld [vmem:[%s1248_s28 + $0x180] sm:$0xff]  ;;  %v783_v4 = vpack.c.bf16 %v328_v2, %v327_v1  ;;  %v360_v5 = vld [vmem:[%s1248_s28 + $0x188] sm:$0xff]  ;;  %v330_v14 = vld [vmem:[%s1248_s28 + $0x98] sm:$0xff]  ;;  %v379_v49 = vunpack.c.l.s4 %v1070_v48 }
  0x5b   : > { %v311_v6 = vld [vmem:[%s1248_s28] sm:$0xff]  ;;  %v312_v7 = vld [vmem:[%s1248_s28 + $0x8] sm:$0xff]  ;;  %v815_v8 = vpack.c.bf16 %v360_v5, %v359_v3  ;;  %v361_v15 = vld [vmem:[%s1248_s28 + $0x190] sm:$0xff]  ;;  %v787_v17 = vpack.c.bf16 %v330_v14, %v329_v12  ;;  %v382_v1 = vshrl.u32 %v381_v50, 7 }
  0x5c   : > { %v785_v9 = vpack.c.bf16 %v312_v7, %v311_v6  ;;  %v343_v10 = vld [vmem:[%s1248_s28 + $0x100] sm:$0xff]  ;;  %v344_v11 = vld [vmem:[%s1248_s28 + $0x108] sm:$0xff]  ;;  %784 = vmatprep.subr.bf16.mxu0 %v783_v4  ;;  %v362_v16 = vld [vmem:[%s1248_s28 + $0x198] sm:$0xff]  ;;  %v380_v0 = vunpack.c.0.s8 %v379_v49 }
  0x5d   : > { %v817_v13 = vpack.c.bf16 %v344_v11, %v343_v10  ;;  %816 = vmatprep.subr.bf16.mxu1 %v815_v8  ;;  %v819_v18 = vpack.c.bf16 %v362_v16, %v361_v15  ;;  %v313_v19 = vld [vmem:[%s1248_s28 + $0x10] sm:$0xff]  ;;  %v314_v20 = vld [vmem:[%s1248_s28 + $0x18] sm:$0xff]  ;;  %v331_v24 = vld [vmem:[%s1248_s28 + $0xa0] sm:$0xff] }
  0x5e   : > { %786 = vmatpush3.bf16.msra.mxu0 %v785_v9  ;;  %v345_v21 = vld [vmem:[%s1248_s28 + $0x110] sm:$0xff]  ;;  %v789_v22 = vpack.c.bf16 %v314_v20, %v313_v19  ;;  %v346_v23 = vld [vmem:[%s1248_s28 + $0x118] sm:$0xff]  ;;  %v332_v25 = vld [vmem:[%s1248_s28 + $0xa8] sm:$0xff]  ;;  %v383_v14 = vsub.s32 %v380_v0, %v382_v1 }
  0x5f   : > { %818 = vmatpush3.bf16.msra.mxu1 %v817_v13  ;;  %788 = vmatprep.subr.bf16.mxu0 %v787_v17  ;;  %v821_v26 = vpack.c.bf16 %v346_v23, %v345_v21  ;;  %v791_v27 = vpack.c.bf16 %v332_v25, %v331_v24  ;;  %v363_v28 = vld [vmem:[%s1248_s28 + $0x1a0] sm:$0xff]  ;;  %v364_v29 = vld [vmem:[%s1248_s28 + $0x1a8] sm:$0xff]  ;;  %v333_v36 = vld [vmem:[%s1248_s28 + $0xb0] sm:$0xff] }
  0x60   : > { %820 = vmatprep.subr.bf16.mxu1 %v819_v18  ;;  %v315_v30 = vld [vmem:[%s1248_s28 + $0x20] sm:$0xff]  ;;  %v823_v31 = vpack.c.bf16 %v364_v29, %v363_v28  ;;  %v316_v32 = vld [vmem:[%s1248_s28 + $0x28] sm:$0xff]  ;;  %v334_v37 = vld [vmem:[%s1248_s28 + $0xb8] sm:$0xff] }
  0x61   : > { %v347_v33 = vld [vmem:[%s1248_s28 + $0x120] sm:$0xff]  ;;  %v348_v34 = vld [vmem:[%s1248_s28 + $0x128] sm:$0xff]  ;;  %v793_v35 = vpack.c.bf16 %v316_v32, %v315_v30  ;;  %v365_v38 = vld [vmem:[%s1248_s28 + $0x1b0] sm:$0xff]  ;;  %v795_v40 = vpack.c.bf16 %v334_v37, %v333_v36 }
  0x62   : > { %790 = vmatpush3.bf16.msra.mxu0 %v789_v22  ;;  %v825_v39 = vpack.c.bf16 %v348_v34, %v347_v33  ;;  %v366_v41 = vld [vmem:[%s1248_s28 + $0x1b8] sm:$0xff]  ;;  %v317_v42 = vld [vmem:[%s1248_s28 + $0x30] sm:$0xff]  ;;  %v335_v47 = vld [vmem:[%s1248_s28 + $0xc0] sm:$0xff] }
  0x63   : > { %822 = vmatpush3.bf16.msra.mxu1 %v821_v26  ;;  %792 = vmatprep.subr.bf16.mxu0 %v791_v27  ;;  %v318_v43 = vld [vmem:[%s1248_s28 + $0x38] sm:$0xff]  ;;  %v827_v44 = vpack.c.bf16 %v366_v41, %v365_v38  ;;  %v349_v45 = vld [vmem:[%s1248_s28 + $0x130] sm:$0xff]  ;;  %v336_v51 = vld [vmem:[%s1248_s28 + $0xc8] sm:$0xff] }
  0x64   : > { %824 = vmatprep.subr.bf16.mxu1 %v823_v31  ;;  %v350_v46 = vld [vmem:[%s1248_s28 + $0x138] sm:$0xff]  ;;  %v367_v52 = vld [vmem:[%s1248_s28 + $0x1c0] sm:$0xff]  ;;  %v368_v53 = vld [vmem:[%s1248_s28 + $0x1c8] sm:$0xff]  ;;  %v797_v54 = vpack.c.bf16 %v318_v43, %v317_v42  ;;  %v799_v56 = vpack.c.bf16 %v336_v51, %v335_v47 }
  0x65   : > { %v829_v55 = vpack.c.bf16 %v350_v46, %v349_v45  ;;  %v319_v57 = vld [vmem:[%s1248_s28 + $0x40] sm:$0xff]  ;;  %v320_v58 = vld [vmem:[%s1248_s28 + $0x48] sm:$0xff]  ;;  %v831_v60 = vpack.c.bf16 %v368_v53, %v367_v52  ;;  %v337_v62 = vld [vmem:[%s1248_s28 + $0xd0] sm:$0xff] }
  0x66   : > { %794 = vmatpush3.bf16.msra.mxu0 %v793_v35  ;;  %v351_v59 = vld [vmem:[%s1248_s28 + $0x140] sm:$0xff]  ;;  %v352_v61 = vld [vmem:[%s1248_s28 + $0x148] sm:$0xff]  ;;  %v338_v63 = vld [vmem:[%s1248_s28 + $0xd8] sm:$0xff]  ;;  %v801_v4 = vpack.c.bf16 %v320_v58, %v319_v57 }
  0x67   : > { %826 = vmatpush3.bf16.msra.mxu1 %v825_v39  ;;  %796 = vmatprep.subr.bf16.mxu0 %v795_v40  ;;  %v369_v2 = vld [vmem:[%s1248_s28 + $0x1d0] sm:$0xff]  ;;  %v370_v3 = vld [vmem:[%s1248_s28 + $0x1d8] sm:$0xff]  ;;  %v833_v5 = vpack.c.bf16 %v352_v61, %v351_v59  ;;  %v803_v6 = vpack.c.bf16 %v338_v63, %v337_v62  ;;  %v339_v12 = vld [vmem:[%s1248_s28 + $0xe0] sm:$0xff] }
  0x68   : > { %828 = vmatprep.subr.bf16.mxu1 %v827_v44  ;;  %v321_v7 = vld [vmem:[%s1248_s28 + $0x50] sm:$0xff]  ;;  %v322_v8 = vld [vmem:[%s1248_s28 + $0x58] sm:$0xff]  ;;  %v835_v10 = vpack.c.bf16 %v370_v3, %v369_v2  ;;  %v340_v13 = vld [vmem:[%s1248_s28 + $0xe8] sm:$0xff] }
  0x69   : > { %v353_v9 = vld [vmem:[%s1248_s28 + $0x150] sm:$0xff]  ;;  %v354_v11 = vld [vmem:[%s1248_s28 + $0x158] sm:$0xff]  ;;  %v371_v15 = vld [vmem:[%s1248_s28 + $0x1e0] sm:$0xff]  ;;  %v805_v17 = vpack.c.bf16 %v322_v8, %v321_v7  ;;  %v807_v20 = vpack.c.bf16 %v340_v13, %v339_v12 }
  0x6a   : > { %798 = vmatpush3.bf16.msra.mxu0 %v797_v54  ;;  %v372_v16 = vld [vmem:[%s1248_s28 + $0x1e8] sm:$0xff]  ;;  %v323_v18 = vld [vmem:[%s1248_s28 + $0x60] sm:$0xff]  ;;  %v837_v19 = vpack.c.bf16 %v354_v11, %v353_v9  ;;  %v310_v23 = vld [vmem:[%s1242_s30] sm:$0xff] }
  0x6b   : > { %830 = vmatpush3.bf16.msra.mxu1 %v829_v55  ;;  %800 = vmatprep.subr.bf16.mxu0 %v799_v56  ;;  %v324_v21 = vld [vmem:[%s1248_s28 + $0x68] sm:$0xff]  ;;  %v355_v22 = vld [vmem:[%s1248_s28 + $0x160] sm:$0xff]  ;;  %v839_v24 = vpack.c.bf16 %v372_v16, %v371_v15  ;;  %v341_v26 = vld [vmem:[%s1248_s28 + $0xf0] sm:$0xff]  ;;  %v384_v28 = vrot.slane %v310_v23, %v383_v14  ;;  %v377_v29 = vcombine.high %v310_v23, %v310_v23 }
  0x6c   : > { %832 = vmatprep.subr.bf16.mxu1 %v831_v60  ;;  %v356_v25 = vld [vmem:[%s1248_s28 + $0x168] sm:$0xff]  ;;  %v342_v27 = vld [vmem:[%s1248_s28 + $0xf8] sm:$0xff]  ;;  %v373_v30 = vld [vmem:[%s1248_s28 + $0x1f0] sm:$0xff]  ;;  %v809_v32 = vpack.c.bf16 %v324_v21, %v323_v18 }
  0x6d   : > { %v374_v31 = vld [vmem:[%s1248_s28 + $0x1f8] sm:$0xff]  ;;  %v392_v33 = vcombine.high %v384_v28, %v384_v28  ;;  %v391_v34 = vrot.slane %v377_v29, %v383_v14  ;;  %v841_v35 = vpack.c.bf16 %v356_v25, %v355_v22  ;;  %v811_v36 = vpack.c.bf16 %v342_v27, %v341_v26  ;;  %v325_v37 = vld [vmem:[%s1248_s28 + $0x70] sm:$0xff]  ;;  %v375_v51 = vld [vmem:[#allocation7] sm:$0x3] }
  0x6e   : > { %802 = vmatpush3.bf16.msra.mxu0 %v801_v4  ;;  %v326_v38 = vld [vmem:[%s1248_s28 + $0x78] sm:$0xff]  ;;  %v843_v39 = vpack.c.bf16 %v374_v31, %v373_v30  ;;  %v357_v40 = vld [vmem:[%s1248_s28 + $0x170] sm:$0xff] }
  0x6f   : > { %834 = vmatpush3.bf16.msra.mxu1 %v833_v5  ;;  %804 = vmatprep.subr.bf16.mxu0 %v803_v6  ;;  %v358_v41 = vld [vmem:[%s1248_s28 + $0x178] sm:$0xff]  ;;  %v393_v42 = vcombine.high %v391_v34, %v391_v34  ;;  %v813_v43 = vpack.c.bf16 %v326_v38, %v325_v37  ;;  %v705_v55 = vld [vmem:[%s1375_s2] ss:$0 sm:$0xff] (!%p704_p13) }
  0x70   : > { %836 = vmatprep.subr.bf16.mxu1 %v835_v10  ;;  %462 = vmatprep.mubr.f32.mxu0 %v392_v33  ;;  %v845_v44 = vpack.c.bf16 %v358_v41, %v357_v40  ;;  %v706_v56 = vld [vmem:[%s1376_s3] ss:$0 sm:$0xff] (!%p704_p13) }
  0x71   : > { %532 = vmatprep.mubr.f32.mxu1 %v393_v42 }
  0x72   : > { %806 = vmatpush3.bf16.msra.mxu0 %v805_v17 }
  0x73   : > { %838 = vmatpush3.bf16.msra.mxu1 %v837_v19  ;;  %808 = vmatprep.subr.bf16.mxu0 %v807_v20 }
  0x74   : > { %840 = vmatprep.subr.bf16.mxu1 %v839_v24 }
  0x76   : > { %810 = vmatpush3.bf16.msra.mxu0 %v809_v32 }
  0x77   : > { %842 = vmatpush3.bf16.msra.mxu1 %v841_v35  ;;  %812 = vmatprep.subr.bf16.mxu0 %v811_v36 }
  0x78   : > { %844 = vmatprep.subr.bf16.mxu1 %v843_v39 }
  0x7a   : > { %814 = vmatpush3.bf16.msra.mxu0 %v813_v43 }
  0x7b   : > { %846 = vmatpush3.bf16.msra.mxu1 %v845_v44 }
  0x7d   : > { %463 = vmatmul.mubr.f32.vlgmr.msra.gmra.mrb[0].mxu0 %v384_v28 }
  0x7e   : > { %533 = vmatmul.mubr.f32.vlgmr.msra.gmra.mrb[0].mxu1 %v391_v34 }
 0x150   : > { %v745_v45 = vpop.f32.mrb[0].mxu0 }
 0x151   : > { %v780_v46 = vpop.f32.mrb[0].mxu1  ;;  %v746_v47 = vpop.f32.mrb[1].mxu0 }
 0x152   : > { %v747_v48 = vadd.f32 %v746_v47, %v745_v45  ;;  %v781_v49 = vpop.f32.mrb[1].mxu1 }
 0x153   : > { %v782_v50 = vadd.f32 %v781_v49, %v780_v46  ;;  %543 = sbr.rel (%p704_p13) target bundleno = 358 (0x166), region = 52 }
 0x155   : > { %v535_v52 = vadd.f32 %v782_v50, %v747_v48 }
 0x157   : > { %v538_v53 = vadd.f32 %v535_v52, %v375_v51 }
 0x159   : > { %539 = vst [vmem:[#allocation7] sm:$0x3] %v538_v53 }
 0x160   : > { %v544_v54 = vld [vmem:[#allocation7] sm:$0x3] }
 0x161   : > { %v552_v57 = vmul.f32 %v705_v55, %v544_v54 }
 0x163   : > { %v560_v58 = vadd.f32 %v706_v56, %v552_v57 }
 0x165   : > { %561 = vst [vmem:[#allocation7] sm:$0x3] %v560_v58 }
 0x166 PF: > { %p1329_p6 = scmp.eq.s32.totalorder %s689_s21, 1  ;;  %s1071_s18 = smov [#allocation7]  }
 0x167   : > { %s572_s8 = sshll.u32 %s1071_s18, 4  ;;  %s573_s8 = int_to_ptr.vmem [resolvable:$true] %s572_s8 }
 0x168   : > { %s979_s12 = scalar_lea.vmem %s573_s8, 32  ;;  %p986_p1 = scmp.lt.s32.totalorder %s573_s8, %s573_s8 }
 0x169   : > { %p980_p8 = scmp.ne.s32.totalorder %s573_s8, %s979_s12  ;;  %p987_p5 = scmp.lt.s32.totalorder %s979_s12, %s979_s12 }
 0x16b   : > { %p981_p3 = pnand %p980_p8, %p1329_p6  ;;  %p988_p10 = por %p987_p5, %p986_p1 }
 0x16d   : > { %p982_p4 = pneg %p981_p3 }
 0x16f   : > { %p989_p11 = pnand %p988_p10, %p982_p4 }
 0x171   : > { %992 = shalt.err (!%p989_p11)
}
 0x172   : > { %s993_s21 = scalar_lea.hbm %s1377_s4, 32 }
 0x173   : > { %p994_p12 = scmp.ne.s32.totalorder %s1377_s4, %s993_s21  ;;  %p999_p7 = scmp.lt.u32.totalorder %s993_s21, %s1377_s4 }
 0x175   : > { %p995_p0 = pnand %p994_p12, %p1329_p6 }
 0x177   : > { %p996_p2 = pneg %p995_p0 }
 0x179   : > { %p1001_p9 = pnand %p999_p7, %p996_p2 }
 0x17b   : > { %1004 = shalt.err (!%p1001_p9)
}
 0x17c   : > { %852 = dma.vmem_to_hbm [thread:$0]  (%p1329_p6), %s573_s8, 32, %s1377_s4, [#allocation4]  }
 0x17d   : > { %1038 = dma.done.wait (%p1329_p6), [#allocation4], 32  }
 0x17e   : > { %1040 = vsyncadd (%p1329_p6), [#allocation4], 4294967264 }
 0x17f PF: > { %s21_s20 = sadd.s32 1, %s1063_s20   ;;  %s1387_s15 = smov %s1047_s16 }
 0x180   : > { %p18_p13 = scmp.ge.s32.totalorder %s21_s20, 4   ;;  %s1388_s16 = smov %s1051_s17 }
 0x181   : > { %s1389_s17 = smov %s1148_s27  ;;  %s1390_s18 = smov %s1059_s19 }
 0x182   : > { %s1391_s19 = smov %s1393_s22  ;;  %20 = sbr.rel (!%p18_p13) target bundleno = 7 (0x7), region = 101 }
 0x189   :  { %585 = vsyncpa [#allocation3], 1 }
 0x18a   :  { %587 = vsyncpa [#allocation3 + $0x1], 1 }
 0x18b   :  { %588 = vsyncpa [#allocation6], 1 }
 0x18c   :  { %590 = vsyncpa [#allocation6 + $0x1], 1 }
 0x18d   :  { %591 = vsyncpa [#allocation4], 1 }
 0x18e   :  { %593 = vsyncpa [#allocation4 + $0x1], 1 }

</bundles_post_ra>
